<compile_context>
chip_gen: v5e
topology: v5e:2x2
jax: 0.10.0
libtpu: 0.0.40
codegen_flags: <defaults>
</compile_context>

<pallas_src>
import math
from functools import partial

import jax
import jax.numpy as jnp
from jax import lax
from jax.experimental import pallas as pl
from jax.experimental.pallas import tpu as pltpu


def _mha_kernel(q_ref, k_ref, v_ref,
                wq_ref, bq_ref, wk_ref, bk_ref, wv_ref, bv_ref,
                wo_ref, bo_ref,
                o_ref,
                kproj_ref, vproj_ref, qproj_ref, xcat_ref,
                *, n_heads, d_pad, scale, compute_dtype):
    qi = pl.program_id(2)   # innermost, "arbitrary" query-tile axis

    # K/V projections are shared by every query tile of the current
    # (split, batch) element: compute them once (qi == 0) into persistent VMEM
    # scratch.  One fused (S,D)x(D,Dp) matmul each keeps the MXU lane-dense.
    @pl.when(qi == 0)
    def _():
        k = k_ref[0]                                            # (S, D)
        v = v_ref[0]
        kproj_ref[...] = (jnp.dot(k, wk_ref[...], preferred_element_type=jnp.float32)
                          + bk_ref[...]).astype(compute_dtype)  # (S, Dp)
        vproj_ref[...] = (jnp.dot(v, wv_ref[...], preferred_element_type=jnp.float32)
                          + bv_ref[...]).astype(compute_dtype)  # (S, Dp)

    # Fused Q projection; fold 1/sqrt(d_f) into Q (TQ*Dp mults, not TQ*S).
    q = q_ref[0]                                                # (TQ, D)
    qproj_ref[...] = ((jnp.dot(q, wq_ref[...], preferred_element_type=jnp.float32)
                       + bq_ref[...]) * scale).astype(compute_dtype)   # (TQ, Dp)

    for h in range(n_heads):                                    # static unroll
        lo, hi = h * d_pad, (h + 1) * d_pad                     # 128-lane aligned
        # Per-head ref slices (not hoisted full-tensor loads) keep vreg live
        # ranges small across the unrolled loop; scratch is already in VMEM.
        Qh = qproj_ref[:, lo:hi]                                # (TQ, d_pad)
        Kh = kproj_ref[:, lo:hi]                                # (S,  d_pad)
        Vh = vproj_ref[:, lo:hi]                                # (S,  d_pad)

        # Q @ K^T without materializing K.T: contract the last axes directly.
        # Zero pad columns contribute exactly 0 to the contraction.
        scores = lax.dot_general(Qh, Kh, (((1,), (1,)), ((), ())),
                                 preferred_element_type=jnp.float32)   # (TQ, S)

        # f32 softmax statistics; normalization deferred past P@V.
        m = jnp.max(scores, axis=-1, keepdims=True)
        p = jnp.exp(scores - m)                                 # <= 1, bf16-safe
        denom = jnp.sum(p, axis=-1, keepdims=True)              # (TQ, 1)

        oh = jnp.dot(p.astype(compute_dtype), Vh,
                     preferred_element_type=jnp.float32)        # (TQ, d_pad)
        # Normalize the narrow head output (TQ*d_pad) instead of the (TQ,S)
        # probability block; approx reciprocal runs on the EUP slot.
        oh = oh * pl.reciprocal(denom, approx=True)

        # Lane-aligned column-slice store into one lane-dense concat buffer.
        xcat_ref[:, lo:hi] = oh.astype(compute_dtype)

    out = (jnp.dot(xcat_ref[...], wo_ref[...],
                   preferred_element_type=jnp.float32) + bo_ref[...])
    o_ref[0] = out.astype(o_ref.dtype)


def multi_head_attention(queries, keys, values, params, *, n_heads,
                         q_tile=None, use_bf16=True, q_split=None):
    """queries/keys/values: (B, S, D).  params in per-head (PyTorch-like) layout."""
    B, S, D = queries.shape
    d_f = D // n_heads
    assert d_f * n_heads == D
    wq, bq, wk, bk, wv, bv, wo, bo = params

    # ---- one-time layout plumbing (outside the kernel) ---------------------
    # Pad each head to a multiple of 128 lanes and stack into head-major
    # lane-dense (D, H*d_pad) weights; matching zero rows in the output proj.
    d_pad = -(-d_f // 128) * 128
    Dp = n_heads * d_pad

    def to_wide_w(w):                                  # (H, D, d_f) -> (D, Dp)
        wp = jnp.pad(w, ((0, 0), (0, 0), (0, d_pad - d_f)))
        return jnp.transpose(wp, (1, 0, 2)).reshape(D, Dp)

    def to_wide_b(b):                                  # (H, d_f) -> (1, Dp)
        return jnp.pad(b, ((0, 0), (0, d_pad - d_f))).reshape(1, Dp)

    wq_w, wk_w, wv_w = to_wide_w(wq), to_wide_w(wk), to_wide_w(wv)
    bq_w, bk_w, bv_w = to_wide_b(bq), to_wide_b(bk), to_wide_b(bv)
    wo_w = jnp.pad(wo.reshape(n_heads, d_f, D),
                   ((0, 0), (0, d_pad - d_f), (0, 0))).reshape(Dp, D)
    bo_w = bo.reshape(1, D)

    # bf16 MXU inputs by default (all generations are bf16-native on the MXU);
    # accumulation, softmax and biases stay f32.
    compute_dtype = jnp.bfloat16 if use_bf16 else jnp.float32
    cast = lambda x: x.astype(compute_dtype)
    q_in, k_in, v_in = cast(queries), cast(keys), cast(values)
    wq_w, wk_w, wv_w, wo_w = cast(wq_w), cast(wk_w), cast(wv_w), cast(wo_w)

    # ---- tiling ------------------------------------------------------------
    if q_tile is None:
        if S <= 512:
            q_tile = S                                  # single full-row tile
        else:
            q_tile = next((t for t in (512, 256, 128) if S % t == 0), S)
    assert S % q_tile == 0
    n_qt = S // q_tile

    # Two-way query split keeps both v7x TensorCores busy when batch == 1;
    # each split recomputes its own K/V projection (cheap vs attention flops).
    if q_split is None:
        q_split = 2 if (B == 1 and n_qt >= 2 and n_qt % 2 == 0) else 1
    assert n_qt % q_split == 0
    n_qt_local = n_qt // q_split

    q_spec   = pl.BlockSpec((1, q_tile, D), lambda s, b, t: (b, s * n_qt_local + t, 0))
    kv_spec  = pl.BlockSpec((1, S, D),      lambda s, b, t: (b, 0, 0))
    wp_spec  = pl.BlockSpec((D, Dp),        lambda s, b, t: (0, 0))
    bp_spec  = pl.BlockSpec((1, Dp),        lambda s, b, t: (0, 0))
    wo_spec  = pl.BlockSpec((Dp, D),        lambda s, b, t: (0, 0))
    bo_spec  = pl.BlockSpec((1, D),         lambda s, b, t: (0, 0))
    out_spec = pl.BlockSpec((1, q_tile, D), lambda s, b, t: (b, s * n_qt_local + t, 0))

    # Per-generation VMEM budget (~3/4 of physical per-core VMEM).
    try:
        vmem_cap = pltpu.get_tpu_info().vmem_capacity_bytes
    except Exception:
        vmem_cap = 64 * 1024 * 1024
    vmem_limit = max(32 * 1024 * 1024,
                     min((vmem_cap * 3) // 4, 112 * 1024 * 1024))

    # Advisory cost estimate for XLA's scheduler.
    itm = jnp.dtype(compute_dtype).itemsize
    flops = 8 * B * S * D * Dp + 4 * B * S * S * Dp
    transcendentals = B * n_heads * S * S
    bytes_accessed = (3 * B * S * D * itm + (3 * D * Dp + Dp * D) * itm
                      + (3 * Dp + D) * 4 + B * S * D * queries.dtype.itemsize)
    cost = pl.CostEstimate(flops=flops, transcendentals=transcendentals,
                           bytes_accessed=bytes_accessed)

    kernel = partial(_mha_kernel, n_heads=n_heads, d_pad=d_pad,
                     scale=1.0 / math.sqrt(float(d_f)),
                     compute_dtype=compute_dtype)

    return pl.pallas_call(
        kernel,
        out_shape=jax.ShapeDtypeStruct((B, S, D), queries.dtype),
        grid_spec=pltpu.PrefetchScalarGridSpec(
            num_scalar_prefetch=0,
            grid=(q_split, B, n_qt_local),
            in_specs=[q_spec, kv_spec, kv_spec,
                      wp_spec, bp_spec,    # wq, bq
                      wp_spec, bp_spec,    # wk, bk
                      wp_spec, bp_spec,    # wv, bv
                      wo_spec, bo_spec],   # wo, bo
            out_specs=out_spec,
            scratch_shapes=[
                pltpu.VMEM((S, Dp), compute_dtype),        # cached K projection
                pltpu.VMEM((S, Dp), compute_dtype),        # cached V projection
                pltpu.VMEM((q_tile, Dp), compute_dtype),   # Q projection
                pltpu.VMEM((q_tile, Dp), compute_dtype),   # concatenated heads
            ]),
        compiler_params=pltpu.CompilerParams(
            dimension_semantics=("parallel", "parallel", "arbitrary"),
            vmem_limit_bytes=int(vmem_limit)),
        cost_estimate=cost,
    )(q_in, k_in, v_in, wq_w, bq_w, wk_w, bk_w, wv_w, bv_w, wo_w, bo_w)


def reference_mha(queries, keys, values, params, *, n_heads):
    """Pure-JAX reference mirroring the PyTorch module semantics."""
    wq, bq, wk, bk, wv, bv, wo, bo = params
    d_f = queries.shape[-1] // n_heads
    outs = []
    for h in range(n_heads):
        Q = queries @ wq[h] + bq[h]
        K = keys @ wk[h] + bk[h]
        V = values @ wv[h] + bv[h]
        s = (Q @ jnp.swapaxes(K, -2, -1)) / math.sqrt(d_f)
        p = jax.nn.softmax(s, axis=-1)
        outs.append(p @ V)
    x = jnp.concatenate(outs, axis=-1)
    return x @ wo + bo


def init_params(key, d_model, n_heads):
    d_f = d_model // n_heads
    ks = jax.random.split(key, 8)
    scale = 0.1
    wq = scale * jax.random.normal(ks[0], (n_heads, d_model, d_f), jnp.float32)
    bq = scale * jax.random.normal(ks[1], (n_heads, d_f), jnp.float32)
    wk = scale * jax.random.normal(ks[2], (n_heads, d_model, d_f), jnp.float32)
    bk = scale * jax.random.normal(ks[3], (n_heads, d_f), jnp.float32)
    wv = scale * jax.random.normal(ks[4], (n_heads, d_model, d_f), jnp.float32)
    bv = scale * jax.random.normal(ks[5], (n_heads, d_f), jnp.float32)
    wo = scale * jax.random.normal(ks[6], (d_model, d_model), jnp.float32)
    bo = scale * jax.random.normal(ks[7], (d_model,), jnp.float32)
    return (wq, bq, wk, bk, wv, bv, wo, bo)


if __name__ == "__main__":
    B, S, D, H = 2, 8, 32, 4   # batch, seq, d_model, n_heads (d_feature = 8)

    key = jax.random.PRNGKey(0)
    kq, kk, kv, kp = jax.random.split(key, 4)
    queries = jax.random.normal(kq, (B, S, D), jnp.float32)
    keys    = jax.random.normal(kk, (B, S, D), jnp.float32)
    values  = jax.random.normal(kv, (B, S, D), jnp.float32)
    params = init_params(kp, D, H)

    ref = reference_mha(queries, keys, values, params, n_heads=H)

    # Default path: bf16 MXU inputs, f32 accumulation/softmax.
    out_bf16 = multi_head_attention(queries, keys, values, params, n_heads=H)
    out_bf16 = jax.block_until_ready(out_bf16)
    assert out_bf16.shape == (B, S, D)
    assert jnp.allclose(out_bf16, ref, atol=5e-2, rtol=5e-2), "bf16 mismatch vs reference"

    # f32 path (near-exact; approx reciprocal contributes ~1e-4 rel error).
    out_f32 = multi_head_attention(queries, keys, values, params, n_heads=H,
                                   use_bf16=False)
    out_f32 = jax.block_until_ready(out_f32)
    assert jnp.allclose(out_f32, ref, atol=2e-3, rtol=2e-3), "f32 mismatch vs reference"

    # Multi-tile + two-way core-split path (B=1, 4 query tiles -> q_split=2).
    B2, S2 = 1, 256
    q2 = jax.random.normal(jax.random.PRNGKey(1), (B2, S2, D), jnp.float32)
    k2 = jax.random.normal(jax.random.PRNGKey(2), (B2, S2, D), jnp.float32)
    v2 = jax.random.normal(jax.random.PRNGKey(3), (B2, S2, D), jnp.float32)
    ref2 = reference_mha(q2, k2, v2, params, n_heads=H)
    out2 = multi_head_attention(q2, k2, v2, params, n_heads=H,
                                q_tile=64, use_bf16=False)
    out2 = jax.block_until_ready(out2)
    assert jnp.allclose(out2, ref2, atol=2e-3, rtol=2e-3), "tiled/split mismatch vs reference"

    print("KERNEL_OK")
</pallas_src>

<mosaic_0001>
module attributes {stable_mosaic.version = 11 : i64} {
  func.func @_mha_kernel(%arg0: i32, %arg1: i32, %arg2: i32, %arg3: memref<1x8x32xbf16, #tpu.memory_space<vmem>>, %arg4: memref<1x8x32xbf16, #tpu.memory_space<vmem>>, %arg5: memref<1x8x32xbf16, #tpu.memory_space<vmem>>, %arg6: memref<32x512xbf16, #tpu.memory_space<vmem>>, %arg7: memref<1x512xf32, #tpu.memory_space<vmem>>, %arg8: memref<32x512xbf16, #tpu.memory_space<vmem>>, %arg9: memref<1x512xf32, #tpu.memory_space<vmem>>, %arg10: memref<32x512xbf16, #tpu.memory_space<vmem>>, %arg11: memref<1x512xf32, #tpu.memory_space<vmem>>, %arg12: memref<512x32xbf16, #tpu.memory_space<vmem>>, %arg13: memref<1x32xf32, #tpu.memory_space<vmem>>, %arg14: memref<1x8x32xf32, #tpu.memory_space<vmem>>, %arg15: memref<8x512xbf16, #tpu.memory_space<vmem>>, %arg16: memref<8x512xbf16, #tpu.memory_space<vmem>>, %arg17: memref<8x512xbf16, #tpu.memory_space<vmem>>, %arg18: memref<8x512xbf16, #tpu.memory_space<vmem>>) attributes {dimension_semantics = [#tpu.dimension_semantics<parallel>, #tpu.dimension_semantics<parallel>, #tpu.dimension_semantics<arbitrary>], iteration_bounds = array<i64: 1, 2, 1>, scalar_prefetch = 0 : i64, scratch_operands = 4 : i64, tpu.core_type = #tpu.core_type<tc>, window_params = [{transform_indices = @transform_0, window_bounds = array<i64: 1, 8, 32>}, {transform_indices = @transform_1, window_bounds = array<i64: 1, 8, 32>}, {transform_indices = @transform_2, window_bounds = array<i64: 1, 8, 32>}, {pipeline_mode = #tpu.pipeline_mode<synchronous>, transform_indices = @transform_3, window_bounds = array<i64: 32, 512>}, {pipeline_mode = #tpu.pipeline_mode<synchronous>, transform_indices = @transform_4, window_bounds = array<i64: 1, 512>}, {pipeline_mode = #tpu.pipeline_mode<synchronous>, transform_indices = @transform_5, window_bounds = array<i64: 32, 512>}, {pipeline_mode = #tpu.pipeline_mode<synchronous>, transform_indices = @transform_6, window_bounds = array<i64: 1, 512>}, {pipeline_mode = #tpu.pipeline_mode<synchronous>, transform_indices = @transform_7, window_bounds = array<i64: 32, 512>}, {pipeline_mode = #tpu.pipeline_mode<synchronous>, transform_indices = @transform_8, window_bounds = array<i64: 1, 512>}, {pipeline_mode = #tpu.pipeline_mode<synchronous>, transform_indices = @transform_9, window_bounds = array<i64: 512, 32>}, {pipeline_mode = #tpu.pipeline_mode<synchronous>, transform_indices = @transform_10, window_bounds = array<i64: 1, 32>}, {transform_indices = @transform_11, window_bounds = array<i64: 1, 8, 32>}]} {
    %c0_i32 = arith.constant 0 : i32
    %0 = arith.cmpi eq, %arg2, %c0_i32 : i32
    %1 = arith.extui %0 : i1 to i32
    %c0_i32_0 = arith.constant 0 : i32
    %2 = arith.cmpi ne, %1, %c0_i32_0 : i32
    scf.if %2 {
      %c0_65 = arith.constant 0 : index
      %c0_66 = arith.constant 0 : index
      %c0_67 = arith.constant 0 : index
      %95 = vector.load %arg4[%c0_65, %c0_66, %c0_67] : memref<1x8x32xbf16, #tpu.memory_space<vmem>>, vector<1x8x32xbf16>
      %96 = vector.shape_cast %95 : vector<1x8x32xbf16> to vector<8x32xbf16>
      %c0_68 = arith.constant 0 : index
      %c0_69 = arith.constant 0 : index
      %c0_70 = arith.constant 0 : index
      %97 = vector.load %arg5[%c0_68, %c0_69, %c0_70] : memref<1x8x32xbf16, #tpu.memory_space<vmem>>, vector<1x8x32xbf16>
      %98 = vector.shape_cast %97 : vector<1x8x32xbf16> to vector<8x32xbf16>
      %c0_71 = arith.constant 0 : index
      %c0_72 = arith.constant 0 : index
      %99 = vector.load %arg8[%c0_71, %c0_72] : memref<32x512xbf16, #tpu.memory_space<vmem>>, vector<32x512xbf16>
      %cst_73 = arith.constant dense<0.000000e+00> : vector<8x512xf32>
      %100 = tpu.matmul %96, %99, %cst_73 {dimension_numbers = #tpu.dot_dimension_numbers<[1], [0], [0], [1], [0, 0, 1, 1], [], []>} : vector<8x32xbf16>, vector<32x512xbf16>, vector<8x512xf32> -> vector<8x512xf32>
      %c0_74 = arith.constant 0 : index
      %c0_75 = arith.constant 0 : index
      %101 = vector.load %arg9[%c0_74, %c0_75] : memref<1x512xf32, #tpu.memory_space<vmem>>, vector<1x512xf32>
      %102 = vector.broadcast %101 : vector<1x512xf32> to vector<8x512xf32>
      %103 = arith.addf %100, %102 : vector<8x512xf32>
      %104 = arith.truncf %103 : vector<8x512xf32> to vector<8x512xbf16>
      %c0_76 = arith.constant 0 : index
      %c0_77 = arith.constant 0 : index
      %105 = vector.load %arg15[%c0_76, %c0_77] : memref<8x512xbf16, #tpu.memory_space<vmem>>, vector<8x512xbf16>
      tpu.vector_store %arg15[%c0_76, %c0_77], %104 {strides = array<i32>} : memref<8x512xbf16, #tpu.memory_space<vmem>>, vector<8x512xbf16>,
      %c0_78 = arith.constant 0 : index
      %c0_79 = arith.constant 0 : index
      %106 = vector.load %arg10[%c0_78, %c0_79] : memref<32x512xbf16, #tpu.memory_space<vmem>>, vector<32x512xbf16>
      %cst_80 = arith.constant dense<0.000000e+00> : vector<8x512xf32>
      %107 = tpu.matmul %98, %106, %cst_80 {dimension_numbers = #tpu.dot_dimension_numbers<[1], [0], [0], [1], [0, 0, 1, 1], [], []>} : vector<8x32xbf16>, vector<32x512xbf16>, vector<8x512xf32> -> vector<8x512xf32>
      %c0_81 = arith.constant 0 : index
      %c0_82 = arith.constant 0 : index
      %108 = vector.load %arg11[%c0_81, %c0_82] : memref<1x512xf32, #tpu.memory_space<vmem>>, vector<1x512xf32>
      %109 = vector.broadcast %108 : vector<1x512xf32> to vector<8x512xf32>
      %110 = arith.addf %107, %109 : vector<8x512xf32>
      %111 = arith.truncf %110 : vector<8x512xf32> to vector<8x512xbf16>
      %c0_83 = arith.constant 0 : index
      %c0_84 = arith.constant 0 : index
      %112 = vector.load %arg16[%c0_83, %c0_84] : memref<8x512xbf16, #tpu.memory_space<vmem>>, vector<8x512xbf16>
      tpu.vector_store %arg16[%c0_83, %c0_84], %111 {strides = array<i32>} : memref<8x512xbf16, #tpu.memory_space<vmem>>, vector<8x512xbf16>,
    } else {
    }
    %c0 = arith.constant 0 : index
    %c0_1 = arith.constant 0 : index
    %c0_2 = arith.constant 0 : index
    %3 = vector.load %arg3[%c0, %c0_1, %c0_2] : memref<1x8x32xbf16, #tpu.memory_space<vmem>>, vector<1x8x32xbf16>
    %4 = vector.shape_cast %3 : vector<1x8x32xbf16> to vector<8x32xbf16>
    %c0_3 = arith.constant 0 : index
    %c0_4 = arith.constant 0 : index
    %5 = vector.load %arg6[%c0_3, %c0_4] : memref<32x512xbf16, #tpu.memory_space<vmem>>, vector<32x512xbf16>
    %cst = arith.constant dense<0.000000e+00> : vector<8x512xf32>
    %6 = tpu.matmul %4, %5, %cst {dimension_numbers = #tpu.dot_dimension_numbers<[1], [0], [0], [1], [0, 0, 1, 1], [], []>} : vector<8x32xbf16>, vector<32x512xbf16>, vector<8x512xf32> -> vector<8x512xf32>
    %c0_5 = arith.constant 0 : index
    %c0_6 = arith.constant 0 : index
    %7 = vector.load %arg7[%c0_5, %c0_6] : memref<1x512xf32, #tpu.memory_space<vmem>>, vector<1x512xf32>
    %8 = vector.broadcast %7 : vector<1x512xf32> to vector<8x512xf32>
    %9 = arith.addf %6, %8 : vector<8x512xf32>
    %cst_7 = arith.constant 0.353553385 : f32
    %10 = vector.broadcast %cst_7 : f32 to vector<8x512xf32>
    %11 = arith.mulf %9, %10 : vector<8x512xf32>
    %12 = arith.truncf %11 : vector<8x512xf32> to vector<8x512xbf16>
    %c0_8 = arith.constant 0 : index
    %c0_9 = arith.constant 0 : index
    %13 = vector.load %arg17[%c0_8, %c0_9] : memref<8x512xbf16, #tpu.memory_space<vmem>>, vector<8x512xbf16>
    tpu.vector_store %arg17[%c0_8, %c0_9], %12 {strides = array<i32>} : memref<8x512xbf16, #tpu.memory_space<vmem>>, vector<8x512xbf16>,
    %c0_10 = arith.constant 0 : index
    %c0_11 = arith.constant 0 : index
    %14 = vector.load %arg17[%c0_10, %c0_11] : memref<8x512xbf16, #tpu.memory_space<vmem>>, vector<8x128xbf16>
    %c0_12 = arith.constant 0 : index
    %c0_13 = arith.constant 0 : index
    %15 = vector.load %arg15[%c0_12, %c0_13] : memref<8x512xbf16, #tpu.memory_space<vmem>>, vector<8x128xbf16>
    %c0_14 = arith.constant 0 : index
    %c0_15 = arith.constant 0 : index
    %16 = vector.load %arg16[%c0_14, %c0_15] : memref<8x512xbf16, #tpu.memory_space<vmem>>, vector<8x128xbf16>
    %cst_16 = arith.constant dense<0.000000e+00> : vector<8x8xf32>
    %17 = tpu.matmul %14, %15, %cst_16 {dimension_numbers = #tpu.dot_dimension_numbers<[1], [1], [0], [0], [0, 0, 1, 0], [], []>} : vector<8x128xbf16>, vector<8x128xbf16>, vector<8x8xf32> -> vector<8x8xf32>
    %cst_17 = arith.constant dense<0xFF800000> : vector<8xf32>
    %18 = vector.multi_reduction <maximumf>, %17, %cst_17 [1] : vector<8x8xf32> to vector<8xf32>
    %19 = vector.shape_cast %18 : vector<8xf32> to vector<8x1xf32>
    %20 = vector.broadcast %19 : vector<8x1xf32> to vector<8x8xf32>
    %21 = arith.subf %17, %20 : vector<8x8xf32>
    %22 = math.exp %21 : vector<8x8xf32>
    %cst_18 = arith.constant dense<0.000000e+00> : vector<8xf32>
    %23 = vector.multi_reduction <add>, %22, %cst_18 [1] : vector<8x8xf32> to vector<8xf32>
    %24 = vector.shape_cast %23 : vector<8xf32> to vector<8x1xf32>
    %25 = arith.truncf %22 : vector<8x8xf32> to vector<8x8xbf16>
    %cst_19 = arith.constant dense<0.000000e+00> : vector<8x128xf32>
    %26 = tpu.matmul %25, %16, %cst_19 {dimension_numbers = #tpu.dot_dimension_numbers<[1], [0], [0], [1], [0, 0, 1, 1], [], []>} : vector<8x8xbf16>, vector<8x128xbf16>, vector<8x128xf32> -> vector<8x128xf32>
    %27 = tpu.reciprocal %24 {approx = true} : vector<8x1xf32> -> vector<8x1xf32>
    %28 = vector.broadcast %27 : vector<8x1xf32> to vector<8x128xf32>
    %29 = arith.mulf %26, %28 : vector<8x128xf32>
    %30 = arith.truncf %29 : vector<8x128xf32> to vector<8x128xbf16>
    %c0_20 = arith.constant 0 : index
    %c0_21 = arith.constant 0 : index
    %31 = vector.load %arg18[%c0_20, %c0_21] : memref<8x512xbf16, #tpu.memory_space<vmem>>, vector<8x128xbf16>
    tpu.vector_store %arg18[%c0_20, %c0_21], %30 {strides = array<i32>} : memref<8x512xbf16, #tpu.memory_space<vmem>>, vector<8x128xbf16>,
    %c0_22 = arith.constant 0 : index
    %c128 = arith.constant 128 : index
    %32 = vector.load %arg17[%c0_22, %c128] : memref<8x512xbf16, #tpu.memory_space<vmem>>, vector<8x128xbf16>
    %c0_23 = arith.constant 0 : index
    %c128_24 = arith.constant 128 : index
    %33 = vector.load %arg15[%c0_23, %c128_24] : memref<8x512xbf16, #tpu.memory_space<vmem>>, vector<8x128xbf16>
    %c0_25 = arith.constant 0 : index
    %c128_26 = arith.constant 128 : index
    %34 = vector.load %arg16[%c0_25, %c128_26] : memref<8x512xbf16, #tpu.memory_space<vmem>>, vector<8x128xbf16>
    %cst_27 = arith.constant dense<0.000000e+00> : vector<8x8xf32>
    %35 = tpu.matmul %32, %33, %cst_27 {dimension_numbers = #tpu.dot_dimension_numbers<[1], [1], [0], [0], [0, 0, 1, 0], [], []>} : vector<8x128xbf16>, vector<8x128xbf16>, vector<8x8xf32> -> vector<8x8xf32>
    %cst_28 = arith.constant dense<0xFF800000> : vector<8xf32>
    %36 = vector.multi_reduction <maximumf>, %35, %cst_28 [1] : vector<8x8xf32> to vector<8xf32>
    %37 = vector.shape_cast %36 : vector<8xf32> to vector<8x1xf32>
    %38 = vector.broadcast %37 : vector<8x1xf32> to vector<8x8xf32>
    %39 = arith.subf %35, %38 : vector<8x8xf32>
    %40 = math.exp %39 : vector<8x8xf32>
    %cst_29 = arith.constant dense<0.000000e+00> : vector<8xf32>
    %41 = vector.multi_reduction <add>, %40, %cst_29 [1] : vector<8x8xf32> to vector<8xf32>
    %42 = vector.shape_cast %41 : vector<8xf32> to vector<8x1xf32>
    %43 = arith.truncf %40 : vector<8x8xf32> to vector<8x8xbf16>
    %cst_30 = arith.constant dense<0.000000e+00> : vector<8x128xf32>
    %44 = tpu.matmul %43, %34, %cst_30 {dimension_numbers = #tpu.dot_dimension_numbers<[1], [0], [0], [1], [0, 0, 1, 1], [], []>} : vector<8x8xbf16>, vector<8x128xbf16>, vector<8x128xf32> -> vector<8x128xf32>
    %45 = tpu.reciprocal %42 {approx = true} : vector<8x1xf32> -> vector<8x1xf32>
    %46 = vector.broadcast %45 : vector<8x1xf32> to vector<8x128xf32>
    %47 = arith.mulf %44, %46 : vector<8x128xf32>
    %48 = arith.truncf %47 : vector<8x128xf32> to vector<8x128xbf16>
    %c0_31 = arith.constant 0 : index
    %c128_32 = arith.constant 128 : index
    %49 = vector.load %arg18[%c0_31, %c128_32] : memref<8x512xbf16, #tpu.memory_space<vmem>>, vector<8x128xbf16>
    tpu.vector_store %arg18[%c0_31, %c128_32], %48 {strides = array<i32>} : memref<8x512xbf16, #tpu.memory_space<vmem>>, vector<8x128xbf16>,
    %c0_33 = arith.constant 0 : index
    %c256 = arith.constant 256 : index
    %50 = vector.load %arg17[%c0_33, %c256] : memref<8x512xbf16, #tpu.memory_space<vmem>>, vector<8x128xbf16>
    %c0_34 = arith.constant 0 : index
    %c256_35 = arith.constant 256 : index
    %51 = vector.load %arg15[%c0_34, %c256_35] : memref<8x512xbf16, #tpu.memory_space<vmem>>, vector<8x128xbf16>
    %c0_36 = arith.constant 0 : index
    %c256_37 = arith.constant 256 : index
    %52 = vector.load %arg16[%c0_36, %c256_37] : memref<8x512xbf16, #tpu.memory_space<vmem>>, vector<8x128xbf16>
    %cst_38 = arith.constant dense<0.000000e+00> : vector<8x8xf32>
    %53 = tpu.matmul %50, %51, %cst_38 {dimension_numbers = #tpu.dot_dimension_numbers<[1], [1], [0], [0], [0, 0, 1, 0], [], []>} : vector<8x128xbf16>, vector<8x128xbf16>, vector<8x8xf32> -> vector<8x8xf32>
    %cst_39 = arith.constant dense<0xFF800000> : vector<8xf32>
    %54 = vector.multi_reduction <maximumf>, %53, %cst_39 [1] : vector<8x8xf32> to vector<8xf32>
    %55 = vector.shape_cast %54 : vector<8xf32> to vector<8x1xf32>
    %56 = vector.broadcast %55 : vector<8x1xf32> to vector<8x8xf32>
    %57 = arith.subf %53, %56 : vector<8x8xf32>
    %58 = math.exp %57 : vector<8x8xf32>
    %cst_40 = arith.constant dense<0.000000e+00> : vector<8xf32>
    %59 = vector.multi_reduction <add>, %58, %cst_40 [1] : vector<8x8xf32> to vector<8xf32>
    %60 = vector.shape_cast %59 : vector<8xf32> to vector<8x1xf32>
    %61 = arith.truncf %58 : vector<8x8xf32> to vector<8x8xbf16>
    %cst_41 = arith.constant dense<0.000000e+00> : vector<8x128xf32>
    %62 = tpu.matmul %61, %52, %cst_41 {dimension_numbers = #tpu.dot_dimension_numbers<[1], [0], [0], [1], [0, 0, 1, 1], [], []>} : vector<8x8xbf16>, vector<8x128xbf16>, vector<8x128xf32> -> vector<8x128xf32>
    %63 = tpu.reciprocal %60 {approx = true} : vector<8x1xf32> -> vector<8x1xf32>
    %64 = vector.broadcast %63 : vector<8x1xf32> to vector<8x128xf32>
    %65 = arith.mulf %62, %64 : vector<8x128xf32>
    %66 = arith.truncf %65 : vector<8x128xf32> to vector<8x128xbf16>
    %c0_42 = arith.constant 0 : index
    %c256_43 = arith.constant 256 : index
    %67 = vector.load %arg18[%c0_42, %c256_43] : memref<8x512xbf16, #tpu.memory_space<vmem>>, vector<8x128xbf16>
    tpu.vector_store %arg18[%c0_42, %c256_43], %66 {strides = array<i32>} : memref<8x512xbf16, #tpu.memory_space<vmem>>, vector<8x128xbf16>,
    %c0_44 = arith.constant 0 : index
    %c384 = arith.constant 384 : index
    %68 = vector.load %arg17[%c0_44, %c384] : memref<8x512xbf16, #tpu.memory_space<vmem>>, vector<8x128xbf16>
    %c0_45 = arith.constant 0 : index
    %c384_46 = arith.constant 384 : index
    %69 = vector.load %arg15[%c0_45, %c384_46] : memref<8x512xbf16, #tpu.memory_space<vmem>>, vector<8x128xbf16>
    %c0_47 = arith.constant 0 : index
    %c384_48 = arith.constant 384 : index
    %70 = vector.load %arg16[%c0_47, %c384_48] : memref<8x512xbf16, #tpu.memory_space<vmem>>, vector<8x128xbf16>
    %cst_49 = arith.constant dense<0.000000e+00> : vector<8x8xf32>
    %71 = tpu.matmul %68, %69, %cst_49 {dimension_numbers = #tpu.dot_dimension_numbers<[1], [1], [0], [0], [0, 0, 1, 0], [], []>} : vector<8x128xbf16>, vector<8x128xbf16>, vector<8x8xf32> -> vector<8x8xf32>
    %cst_50 = arith.constant dense<0xFF800000> : vector<8xf32>
    %72 = vector.multi_reduction <maximumf>, %71, %cst_50 [1] : vector<8x8xf32> to vector<8xf32>
    %73 = vector.shape_cast %72 : vector<8xf32> to vector<8x1xf32>
    %74 = vector.broadcast %73 : vector<8x1xf32> to vector<8x8xf32>
    %75 = arith.subf %71, %74 : vector<8x8xf32>
    %76 = math.exp %75 : vector<8x8xf32>
    %cst_51 = arith.constant dense<0.000000e+00> : vector<8xf32>
    %77 = vector.multi_reduction <add>, %76, %cst_51 [1] : vector<8x8xf32> to vector<8xf32>
    %78 = vector.shape_cast %77 : vector<8xf32> to vector<8x1xf32>
    %79 = arith.truncf %76 : vector<8x8xf32> to vector<8x8xbf16>
    %cst_52 = arith.constant dense<0.000000e+00> : vector<8x128xf32>
    %80 = tpu.matmul %79, %70, %cst_52 {dimension_numbers = #tpu.dot_dimension_numbers<[1], [0], [0], [1], [0, 0, 1, 1], [], []>} : vector<8x8xbf16>, vector<8x128xbf16>, vector<8x128xf32> -> vector<8x128xf32>
    %81 = tpu.reciprocal %78 {approx = true} : vector<8x1xf32> -> vector<8x1xf32>
    %82 = vector.broadcast %81 : vector<8x1xf32> to vector<8x128xf32>
    %83 = arith.mulf %80, %82 : vector<8x128xf32>
    %84 = arith.truncf %83 : vector<8x128xf32> to vector<8x128xbf16>
    %c0_53 = arith.constant 0 : index
    %c384_54 = arith.constant 384 : index
    %85 = vector.load %arg18[%c0_53, %c384_54] : memref<8x512xbf16, #tpu.memory_space<vmem>>, vector<8x128xbf16>
    tpu.vector_store %arg18[%c0_53, %c384_54], %84 {strides = array<i32>} : memref<8x512xbf16, #tpu.memory_space<vmem>>, vector<8x128xbf16>,
    %c0_55 = arith.constant 0 : index
    %c0_56 = arith.constant 0 : index
    %86 = vector.load %arg18[%c0_55, %c0_56] : memref<8x512xbf16, #tpu.memory_space<vmem>>, vector<8x512xbf16>
    %c0_57 = arith.constant 0 : index
    %c0_58 = arith.constant 0 : index
    %87 = vector.load %arg12[%c0_57, %c0_58] : memref<512x32xbf16, #tpu.memory_space<vmem>>, vector<512x32xbf16>
    %cst_59 = arith.constant dense<0.000000e+00> : vector<8x32xf32>
    %88 = tpu.matmul %86, %87, %cst_59 {dimension_numbers = #tpu.dot_dimension_numbers<[1], [0], [0], [1], [0, 0, 1, 1], [], []>} : vector<8x512xbf16>, vector<512x32xbf16>, vector<8x32xf32> -> vector<8x32xf32>
    %c0_60 = arith.constant 0 : index
    %c0_61 = arith.constant 0 : index
    %89 = vector.load %arg13[%c0_60, %c0_61] : memref<1x32xf32, #tpu.memory_space<vmem>>, vector<1x32xf32>
    %90 = vector.broadcast %89 : vector<1x32xf32> to vector<8x32xf32>
    %91 = arith.addf %88, %90 : vector<8x32xf32>
    %c0_62 = arith.constant 0 : index
    %c0_63 = arith.constant 0 : index
    %c0_64 = arith.constant 0 : index
    %92 = vector.load %arg14[%c0_62, %c0_63, %c0_64] : memref<1x8x32xf32, #tpu.memory_space<vmem>>, vector<1x8x32xf32>
    %93 = vector.shape_cast %92 : vector<1x8x32xf32> to vector<8x32xf32>
    %94 = vector.shape_cast %91 : vector<8x32xf32> to vector<1x8x32xf32>
    tpu.vector_store %arg14[%c0_62, %c0_63, %c0_64], %94 {strides = array<i32>} : memref<1x8x32xf32, #tpu.memory_space<vmem>>, vector<1x8x32xf32>,
    return
  }
  func.func @transform_0(%arg0: i32, %arg1: i32, %arg2: i32) -> (i32, i32, i32) {
    %c1_i32 = arith.constant 1 : i32
    %0 = arith.muli %arg0, %c1_i32 : i32
    %1 = arith.addi %0, %arg2 : i32
    %c0_i32 = arith.constant 0 : i32
    %c0_i32_0 = arith.constant 0 : i32
    return %arg1, %1, %c0_i32 : i32, i32, i32
  }
  func.func @transform_1(%arg0: i32, %arg1: i32, %arg2: i32) -> (i32, i32, i32) {
    %c0_i32 = arith.constant 0 : i32
    %c0_i32_0 = arith.constant 0 : i32
    %c0_i32_1 = arith.constant 0 : i32
    return %arg1, %c0_i32, %c0_i32_0 : i32, i32, i32
  }
  func.func @transform_2(%arg0: i32, %arg1: i32, %arg2: i32) -> (i32, i32, i32) {
    %c0_i32 = arith.constant 0 : i32
    %c0_i32_0 = arith.constant 0 : i32
    %c0_i32_1 = arith.constant 0 : i32
    return %arg1, %c0_i32, %c0_i32_0 : i32, i32, i32
  }
  func.func @transform_3(%arg0: i32, %arg1: i32, %arg2: i32) -> (i32, i32) {
    %c0_i32 = arith.constant 0 : i32
    %c0_i32_0 = arith.constant 0 : i32
    %c0_i32_1 = arith.constant 0 : i32
    return %c0_i32, %c0_i32_0 : i32, i32
  }
  func.func @transform_4(%arg0: i32, %arg1: i32, %arg2: i32) -> (i32, i32) {
    %c0_i32 = arith.constant 0 : i32
    %c0_i32_0 = arith.constant 0 : i32
    %c0_i32_1 = arith.constant 0 : i32
    return %c0_i32, %c0_i32_0 : i32, i32
  }
  func.func @transform_5(%arg0: i32, %arg1: i32, %arg2: i32) -> (i32, i32) {
    %c0_i32 = arith.constant 0 : i32
    %c0_i32_0 = arith.constant 0 : i32
    %c0_i32_1 = arith.constant 0 : i32
    return %c0_i32, %c0_i32_0 : i32, i32
  }
  func.func @transform_6(%arg0: i32, %arg1: i32, %arg2: i32) -> (i32, i32) {
    %c0_i32 = arith.constant 0 : i32
    %c0_i32_0 = arith.constant 0 : i32
    %c0_i32_1 = arith.constant 0 : i32
    return %c0_i32, %c0_i32_0 : i32, i32
  }
  func.func @transform_7(%arg0: i32, %arg1: i32, %arg2: i32) -> (i32, i32) {
    %c0_i32 = arith.constant 0 : i32
    %c0_i32_0 = arith.constant 0 : i32
    %c0_i32_1 = arith.constant 0 : i32
    return %c0_i32, %c0_i32_0 : i32, i32
  }
  func.func @transform_8(%arg0: i32, %arg1: i32, %arg2: i32) -> (i32, i32) {
    %c0_i32 = arith.constant 0 : i32
    %c0_i32_0 = arith.constant 0 : i32
    %c0_i32_1 = arith.constant 0 : i32
    return %c0_i32, %c0_i32_0 : i32, i32
  }
  func.func @transform_9(%arg0: i32, %arg1: i32, %arg2: i32) -> (i32, i32) {
    %c0_i32 = arith.constant 0 : i32
    %c0_i32_0 = arith.constant 0 : i32
    %c0_i32_1 = arith.constant 0 : i32
    return %c0_i32, %c0_i32_0 : i32, i32
  }
  func.func @transform_10(%arg0: i32, %arg1: i32, %arg2: i32) -> (i32, i32) {
    %c0_i32 = arith.constant 0 : i32
    %c0_i32_0 = arith.constant 0 : i32
    %c0_i32_1 = arith.constant 0 : i32
    return %c0_i32, %c0_i32_0 : i32, i32
  }
  func.func @transform_11(%arg0: i32, %arg1: i32, %arg2: i32) -> (i32, i32, i32) {
    %c1_i32 = arith.constant 1 : i32
    %0 = arith.muli %arg0, %c1_i32 : i32
    %1 = arith.addi %0, %arg2 : i32
    %c0_i32 = arith.constant 0 : i32
    %c0_i32_0 = arith.constant 0 : i32
    return %arg1, %1, %c0_i32 : i32, i32, i32
  }
}

</mosaic_0001>

<bundles_post_ra>
// kernel: tpu_custom_call.1
= control target key start
LH: loop header
LB: loop body
LE: loop exit
PB: predicated region body
PF: predicated region fallthrough
CT: control target
= control target key end

     0   :  { %s2377_s0 = inlined_call_operand.vmem [shape: bf16[2,8,32], index: 0, kind: input, shape index: {}]   ;;  %s2378_s1 = inlined_call_operand.vmem [shape: bf16[2,8,32], index: 1, kind: input, shape index: {}]   ;;  %s2379_s2 = inlined_call_operand.vmem [shape: bf16[2,8,32], index: 2, kind: input, shape index: {}]   ;;  %s2380_s3 = inlined_call_operand.vmem [shape: bf16[32,512], index: 3, kind: input, shape index: {}]   ;;  %s2381_s4 = inlined_call_operand.vmem [shape: f32[1,512], index: 4, kind: input, shape index: {}]   ;;  %s2382_s5 = inlined_call_operand.vmem [shape: bf16[32,512], index: 5, kind: input, shape index: {}]   ;;  %s2383_s6 = inlined_call_operand.vmem [shape: f32[1,512], index: 6, kind: input, shape index: {}]   ;;  %s2384_s7 = inlined_call_operand.vmem [shape: bf16[32,512], index: 7, kind: input, shape index: {}]   ;;  %s2385_s8 = inlined_call_operand.vmem [shape: f32[1,512], index: 8, kind: input, shape index: {}]   ;;  %s2386_s9 = inlined_call_operand.vmem [shape: bf16[512,32], index: 9, kind: input, shape index: {}]   ;;  %s2387_s10 = inlined_call_operand.vmem [shape: f32[1,32], index: 10, kind: input, shape index: {}]   ;;  %s2388_s11 = inlined_call_operand.hbm [shape: f32[2,8,32], index: 11, kind: output, shape index: {}]  }
   0x1   :  { %2391 = sst [smem:[#allocation11_spill]] %s2382_s5 }
   0x2   :  { %16 = vsyncpa [#allocation7], 0 }
   0x3   :  { %18 = vsyncpa [#allocation7 + $0x1], 0  ;;  %s1988_s17 = smov 0   ;;  %s1990_s18 = smov 0  }
   0x4   :  { %s1992_s19 = smov 0   ;;  %s1994_s20 = smov 0  }
   0x5   :  { %s1996_s21 = smov 0   ;;  %s1998_s22 = smov 0  }
   0x6 LB: > { %2392 = sst [smem:[#allocation9_spill]] %s1922_s21  ;;  %s1467_s23 = sadd.s32 4294967295, %s1926_s22   ;;  %s1926_s22 = sphi %s1998_s22, %s24_s22   ;;  %s1922_s21 = sphi %s1996_s21, %s2398_s21   ;;  %s1918_s20 = sphi %s1994_s20, %s2397_s20   ;;  %s1914_s19 = sphi %s1992_s19, %s2401_s19   ;;  %s1910_s18 = sphi %s1990_s18, %s2400_s18   ;;  %s1906_s17 = sphi %s1988_s17, %s2399_s17  }
   0x7   : > { %s1468_s24 = sadd.s32 4294967294, %s1926_s22   ;;  %s39_s25 = sadd.s32 1, %s1922_s21 }
   0x8   : > { %s304_s26 = sadd.s32 1, %s1914_s19  ;;  %p41_p0 = scmp.ge.s32.totalorder %s39_s25, 2 }
   0x9   : > { %p314_p1 = scmp.ne.s32.totalorder %s1914_s19, %s1910_s18  ;;  %p315_p2 = scmp.eq.s32.totalorder %s1467_s23, 1 }
   0xa   : > { %p320_p3 = scmp.ne.s32.totalorder %s1910_s18, %s1906_s17  ;;  %s2403_s25 = smov (%p41_p0, %s39_s25), 0 }
   0xb   : > { %2393 = sst [smem:[#allocation10_spill]] %s2403_s25  ;;  %p2028_p4 = por %p315_p2, %p314_p1 }
   0xc   : > { %p321_p5 = scmp.eq.s32.totalorder %s1468_s24, 1  ;;  %s299_s28 = ssub.s32 %s1922_s21, %s2403_s25 }
   0xd   : > { %p1471_p6 = scmp.ge.s32.totalorder %s1926_s22, 1  ;;  %p302_p7 = scmp.eq.s32.totalorder %s299_s28, 0 }
   0xe   : > { %p2035_p8 = por %p321_p5, %p320_p3  ;;  %p389_p9 = scmp.lt.s32.totalorder %s1926_s22, 3 }
   0xf   : > { %s2041_s30 = scalar_select %p302_p7, %s1914_s19, %s304_s26  }
  0x10   : > { %p390_p10 = pnand %p1471_p6, %p389_p9 }
  0x11   : > { %s2396_s5 = sld [smem:[#allocation11_spill]] (!%p390_p10)  ;;  %p441_p11 = scmp.lt.s32.totalorder (!%p390_p10), %s1918_s20, 1 }
  0x12   : > { %393 = sbr.rel (%p390_p10) target bundleno = 779 (0x30b), region = 64  ;;  %s437_s28 = sand.u32 (!%p390_p10), 1, %s1910_s18  }
  0x13   : > { %s1472_s26 = sshll.u32 (!%p390_p10), %s437_s28, 3 }
  0x14   : > { %s439_s15 = scalar_lea.vmem (!%p390_p10), [#allocation6], %s1472_s26  ;;  %s1868_s26 = scalar_lea.hbm (!%p390_p10), %s2388_s11, 16 }
  0x17   : > { %v1494_v0 = vld [vmem:[%s2396_s5 + $0x20] sm:$0xf]  ;;  %v1726_v1 = vld [vmem:[%s2396_s5 + $0x2c] sm:$0xf0]  ;;  %v1724_v2 = vld [vmem:[%s2396_s5 + $0x24] sm:$0xf] }
  0x18   : > { %v1495_v3 = vor.u32 %v1726_v1, %v1494_v0  ;;  %v1496_v4 = vld [vmem:[%s2396_s5 + $0x30] sm:$0xf0]  ;;  %v1502_v5 = vld [vmem:[%s2396_s5 + $0x28] sm:$0xf]  ;;  %v1727_v6 = vld [vmem:[%s2396_s5 + $0x34] sm:$0xf0] }
  0x19   : > { %v1499_v7 = vor.u32 %v1724_v2, %v1496_v4  ;;  %v1503_v8 = vor.u32 %v1727_v6, %v1502_v5  ;;  %v1725_v9 = vld [vmem:[%s2396_s5 + $0x2c] sm:$0xf]  ;;  %v1504_v10 = vld [vmem:[%s2396_s5 + $0x38] sm:$0xf0]  ;;  %v1478_v11 = vld [vmem:[%s2396_s5] sm:$0xf] }
  0x1a   : > { %533 = vmatpush.bf16.msra.mxu0 %v1495_v3  ;;  %v1507_v12 = vor.u32 %v1725_v9, %v1504_v10  ;;  %v1722_v13 = vld [vmem:[%s2396_s5 + $0xc] sm:$0xf0]  ;;  %v1720_v14 = vld [vmem:[%s2396_s5 + $0x4] sm:$0xf]  ;;  %v1480_v15 = vld [vmem:[%s2396_s5 + $0x10] sm:$0xf0] }
  0x1b   : > { %546 = vmatpush.bf16.msra.mxu1 %v1499_v7  ;;  %559 = vmatpush.bf16.msra.mxu2 %v1503_v8  ;;  %v1479_v16 = vor.u32 %v1722_v13, %v1478_v11  ;;  %v1483_v17 = vor.u32 %v1720_v14, %v1480_v15  ;;  %v1486_v18 = vld [vmem:[%s2396_s5 + $0x8] sm:$0xf]  ;;  %v1723_v19 = vld [vmem:[%s2396_s5 + $0x14] sm:$0xf0]  ;;  %v1721_v20 = vld [vmem:[%s2396_s5 + $0xc] sm:$0xf] }
  0x1c   : > { %572 = vmatpush.bf16.msra.mxu3 %v1507_v12  ;;  %v1487_v21 = vor.u32 %v1723_v19, %v1486_v18  ;;  %v1488_v22 = vld [vmem:[%s2396_s5 + $0x18] sm:$0xf0]  ;;  %v1530_v23 = vld [vmem:[%s2384_s7 + $0x20] sm:$0xf]  ;;  %v1734_v25 = vld [vmem:[%s2384_s7 + $0x2c] sm:$0xf0] }
  0x1d   : > { %v1491_v24 = vor.u32 %v1721_v20, %v1488_v22  ;;  %v1732_v26 = vld [vmem:[%s2384_s7 + $0x24] sm:$0xf]  ;;  %v1532_v27 = vld [vmem:[%s2384_s7 + $0x30] sm:$0xf0]  ;;  %s442_s25 = scalar_select %p441_p11, %s1918_s20, 1  ;;  %v1531_v28 = vor.u32 %v1734_v25, %v1530_v23  ;;  %vm523_vm0 = vcmask 261120  }
  0x1e   : > { %534 = vmatpush.bf16.msra.mxu0 %v1479_v16  ;;  %v1535_v29 = vor.u32 %v1732_v26, %v1532_v27  ;;  %v1514_v30 = vld [vmem:[%s2384_s7] sm:$0xf]  ;;  %v1730_v31 = vld [vmem:[%s2384_s7 + $0xc] sm:$0xf0]  ;;  %v1728_v32 = vld [vmem:[%s2384_s7 + $0x4] sm:$0xf] }
  0x1f   : > { %547 = vmatpush.bf16.msra.mxu1 %v1483_v17  ;;  %560 = vmatpush.bf16.msra.mxu2 %v1487_v21  ;;  %v1516_v33 = vld [vmem:[%s2384_s7 + $0x10] sm:$0xf0]  ;;  %v1538_v34 = vld [vmem:[%s2384_s7 + $0x28] sm:$0xf]  ;;  %s2120_s21 = sshll.u32 %s442_s25, 2  ;;  %v1515_v37 = vor.u32 %v1730_v31, %v1514_v30  ;;  %vm853_vm1 = vcmask 1043456  }
  0x20   : > { %573 = vmatpush.bf16.msra.mxu3 %v1491_v24  ;;  %v1735_v35 = vld [vmem:[%s2384_s7 + $0x34] sm:$0xf0]  ;;  %v1733_v36 = vld [vmem:[%s2384_s7 + $0x2c] sm:$0xf]  ;;  %s452_s16 = scalar_lea.vmem %s2378_s1, %s2120_s21  ;;  %v1519_v38 = vor.u32 %v1728_v32, %v1516_v33  ;;  %v1540_v39 = vld [vmem:[%s2384_s7 + $0x38] sm:$0xf0]  ;;  %s447_s24 = scalar_lea.vmem %s2377_s0, %s2120_s21 }
  0x21   : > { %v1522_v40 = vld [vmem:[%s2384_s7 + $0x8] sm:$0xf]  ;;  %v463_v41 = vld [vmem:[%s452_s16] sm:$0xf]  ;;  %v1539_v42 = vor.u32 %v1735_v35, %v1538_v34  ;;  %v1543_v43 = vor.u32 %v1733_v36, %v1540_v39  ;;  %v1731_v44 = vld [vmem:[%s2384_s7 + $0x14] sm:$0xf0]  ;;  %s456_s16 = scalar_lea.vmem %s2379_s2, %s2120_s21 }
  0x22   : > { %650 = vmatpush.bf16.msrb.mxu0 %v1531_v28  ;;  %v1729_v45 = vld [vmem:[%s2384_s7 + $0xc] sm:$0xf]  ;;  %1509 = vmatmul.msk.bf16.vlgmr.msra.gmra.mxu1 %vm523_vm0, %v463_v41  ;;  %v1524_v46 = vld [vmem:[%s2384_s7 + $0x18] sm:$0xf0]  ;;  %v1566_v47 = vld [vmem:[%s2380_s3 + $0x20] sm:$0xf]  ;;  %v1523_v57 = vor.u32 %v1731_v44, %v1522_v40 }
  0x23   : > { %663 = vmatpush.bf16.msrb.mxu1 %v1535_v29  ;;  %1508 = vmatmul.msk.bf16.vlgmr.msra.gmra.mxu0 %vm523_vm0, %v463_v41  ;;  %v1742_v48 = vld [vmem:[%s2380_s3 + $0x2c] sm:$0xf0]  ;;  %v1740_v50 = vld [vmem:[%s2380_s3 + $0x24] sm:$0xf]  ;;  %v1568_v51 = vld [vmem:[%s2380_s3 + $0x30] sm:$0xf0]  ;;  %v1527_v58 = vor.u32 %v1729_v45, %v1524_v46 }
  0x24   : > { %1510 = vmatmul.msk.bf16.vlgmr.msra.gmra.mxu2 %vm523_vm0, %v463_v41  ;;  %1511 = vmatmul.msk.bf16.vlgmr.msra.gmra.mxu3 %vm523_vm0, %v463_v41  ;;  %v1567_v49 = vor.u32 %v1742_v48, %v1566_v47  ;;  %v1550_v52 = vld [vmem:[%s2380_s3] sm:$0xf]  ;;  %v1571_v53 = vor.u32 %v1740_v50, %v1568_v51  ;;  %v1738_v54 = vld [vmem:[%s2380_s3 + $0xc] sm:$0xf0]  ;;  %v1736_v55 = vld [vmem:[%s2380_s3 + $0x4] sm:$0xf] }
  0x25   : > { %v1552_v56 = vld [vmem:[%s2380_s3 + $0x10] sm:$0xf0]  ;;  %676 = vmatpush.bf16.msrb.mxu2 %v1539_v42  ;;  %689 = vmatpush.bf16.msrb.mxu3 %v1543_v43  ;;  %v1574_v59 = vld [vmem:[%s2380_s3 + $0x28] sm:$0xf]  ;;  %v1743_v60 = vld [vmem:[%s2380_s3 + $0x34] sm:$0xf0]  ;;  %v1551_v62 = vor.u32 %v1738_v54, %v1550_v52 }
  0x26   : > { %651 = vmatpush.bf16.msrb.mxu0 %v1515_v37  ;;  %v1741_v61 = vld [vmem:[%s2380_s3 + $0x2c] sm:$0xf]  ;;  %v1555_v63 = vor.u32 %v1736_v55, %v1552_v56  ;;  %v1576_v0 = vld [vmem:[%s2380_s3 + $0x38] sm:$0xf0]  ;;  %v1575_v1 = vor.u32 %v1743_v60, %v1574_v59  ;;  %v1558_v3 = vld [vmem:[%s2380_s3 + $0x8] sm:$0xf] }
  0x27   : > { %664 = vmatpush.bf16.msrb.mxu1 %v1519_v38  ;;  %v1579_v2 = vor.u32 %v1741_v61, %v1576_v0  ;;  %v1739_v4 = vld [vmem:[%s2380_s3 + $0x14] sm:$0xf0]  ;;  %v1737_v5 = vld [vmem:[%s2380_s3 + $0xc] sm:$0xf]  ;;  %v1560_v6 = vld [vmem:[%s2380_s3 + $0x18] sm:$0xf0] }
  0x28   : > { %v1559_v7 = vor.u32 %v1739_v4, %v1558_v3  ;;  %v1563_v8 = vor.u32 %v1737_v5, %v1560_v6  ;;  %v464_v9 = vld [vmem:[%s456_s16] sm:$0xf]  ;;  %vm839_vm2 = vcmask 64512   ;;  %s1717_s21 = sshll.u32 %s1918_s20, 3  ;;  %s1365_s5 = sshll.u32 %s439_s15, 4  ;;  %s1366_s5 = int_to_ptr.vmem [resolvable:$true] %s1365_s5 }
  0x29   : > { %677 = vmatpush.bf16.msrb.mxu2 %v1523_v57  ;;  %690 = vmatpush.bf16.msrb.mxu3 %v1527_v58  ;;  %v700_v10 = vld [vmem:[%s447_s24] sm:$0xf]  ;;  %s1363_s14 = scalar_lea.hbm %s2388_s11, %s1717_s21  ;;  %s1351_s25 = scalar_lea.sflag [#allocation7], %s437_s28 }
  0x2a   : > { %769 = vmatpush.bf16.msra.mxu0 %v1567_v49  ;;  %v473_v11 = vld [vmem:[%s2383_s6] sm:$0xf]  ;;  %s1367_s16 = sshll.u32 %s1363_s14, 4  ;;  %s1368_s16 = int_to_ptr.hbm [resolvable:$true] %s1367_s16 }
  0x2b   : > { %782 = vmatpush.bf16.msra.mxu1 %v1571_v53  ;;  %v475_v12 = vperm.slane %v473_v11, 0  ;;  %v476_v13 = vperm.slane %v473_v11, 1  ;;  %v477_v19 = vperm.slane %v473_v11, 2  ;;  %v478_v20 = vperm.slane %v473_v11, 3  ;;  %v591_v28 = vld [vmem:[%s2385_s8] sm:$0xf] }
  0x2c   : > { %v593_v31 = vperm.slane %v591_v28, 0  ;;  %v594_v32 = vperm.slane %v591_v28, 1  ;;  %v595_v42 = vperm.slane %v591_v28, 2  ;;  %v596_v43 = vperm.slane %v591_v28, 3  ;;  %v709_v51 = vld [vmem:[%s2381_s4] sm:$0xf] }
  0x2d   : > { %795 = vmatpush.bf16.msra.mxu2 %v1575_v1  ;;  %808 = vmatpush.bf16.msra.mxu3 %v1579_v2  ;;  %v711_v56 = vperm.slane %v709_v51, 0  ;;  %v712_v57 = vperm.slane %v709_v51, 1  ;;  %v713_v3 = vperm.slane %v709_v51, 2  ;;  %v714_v4 = vperm.slane %v709_v51, 3  ;;  %s1862_s20 = sshra.s32 %s1368_s16, 4  ;;  %s1863_s20 = int_to_ptr.hbm [resolvable:$true] %s1862_s20 }
  0x2e   : > { %770 = vmatpush.bf16.msra.mxu0 %v1551_v62  ;;  %s1864_s23 = scalar_lea.hbm %s1863_s20, 8  ;;  %p1869_p1 = scmp.lt.s32.totalorder %s1863_s20, %s2388_s11 }
  0x2f   : > { %783 = vmatpush.bf16.msra.mxu1 %v1555_v63  ;;  %p1865_p12 = scmp.ne.s32.totalorder %s1863_s20, %s1864_s23  ;;  %p1870_p2 = scmp.lt.s32.totalorder %s1868_s26, %s1864_s23 }
  0x31   : > { %796 = vmatpush.bf16.msra.mxu2 %v1559_v7  ;;  %809 = vmatpush.bf16.msra.mxu3 %v1563_v8  ;;  %p1866_p13 = pnand %p1865_p12, %p2028_p4  ;;  %p1871_p3 = por %p1870_p2, %p1869_p1 }
  0x32   : > { %1545 = vmatmul.msk.bf16.vlgmr.msrb.gmra.mxu1 %vm523_vm0, %v464_v9 }
  0x33   : > { %1544 = vmatmul.msk.bf16.vlgmr.msrb.gmra.mxu0 %vm523_vm0, %v464_v9  ;;  %p1867_p0 = pneg %p1866_p13 }
  0x34   : > { %1546 = vmatmul.msk.bf16.vlgmr.msrb.gmra.mxu2 %vm523_vm0, %v464_v9  ;;  %1547 = vmatmul.msk.bf16.vlgmr.msrb.gmra.mxu3 %vm523_vm0, %v464_v9 }
  0x35   : > { %p1872_p5 = pnand %p1871_p3, %p1867_p0 }
  0x42   : > { %1581 = vmatmul.msk.bf16.vlgmr.msra.gmra.mxu1 %vm523_vm0, %v700_v10 }
  0x43   : > { %1580 = vmatmul.msk.bf16.vlgmr.msra.gmra.mxu0 %vm523_vm0, %v700_v10 }
  0x44   : > { %1582 = vmatmul.msk.bf16.vlgmr.msra.gmra.mxu2 %vm523_vm0, %v700_v10  ;;  %1583 = vmatmul.msk.bf16.vlgmr.msra.gmra.mxu3 %vm523_vm0, %v700_v10 }
  0x9f   : > { %v549_v15 = vpop.f32.mrf.mxu1 }
  0xa0   : > { %v536_v14 = vpop.f32.mrf.mxu0  ;;  %v550_v17 = vadd.f32 %v549_v15, %v476_v13 }
  0xa1   : > { %v537_v16 = vadd.f32 %v536_v14, %v475_v12 }
  0xa3   : > { %v579_v18 = vpack.c.bf16 %v550_v17, %v537_v16 }
  0xa5   : > { %581 = vst [vmem:[#allocation2] sm:$0xff] %v579_v18 }
  0xa7   : > { %v562_v21 = vpop.f32.mrf.mxu2  ;;  %v575_v22 = vpop.f32.mrf.mxu3 }
  0xa8   : > { %v538_v23 = vpop.f32.mrf.mxu0  ;;  %v551_v24 = vpop.f32.mrf.mxu1  ;;  %v563_v25 = vadd.f32 %v562_v21, %v477_v19  ;;  %v576_v26 = vadd.f32 %v575_v22, %v478_v20 }
  0xaa   : > { %v580_v27 = vpack.c.bf16 %v576_v26, %v563_v25 }
  0xac   : > { %582 = vst [vmem:[#allocation2 + $0x8] sm:$0xff] %v580_v27  ;;  %v824_v29 = vld [vmem:[#allocation2] sm:$0xf]  ;;  %v875_v30 = vld [vmem:[#allocation2 + $0x4] sm:$0xf] }
  0xad   : > { %833 = vmatpush.bf16.xpose.msrb.mxu0 %v824_v29  ;;  %884 = vmatpush.bf16.xpose.msrb.mxu2 %v875_v30 }
  0xaf   : > { %v564_v33 = vpop.f32.mrf.mxu2  ;;  %v577_v34 = vpop.f32.mrf.mxu3 }
  0xb0   : > { %v653_v35 = vpop.f32.mrf.mxu0  ;;  %v666_v36 = vpop.f32.mrf.mxu1 }
  0xb1   : > { %v654_v37 = vadd.f32 %v653_v35, %v593_v31  ;;  %v667_v38 = vadd.f32 %v666_v36, %v594_v32 }
  0xb3   : > { %v696_v39 = vpack.c.bf16 %v667_v38, %v654_v37  ;;  %v924_v40 = vld [vmem:[#allocation2 + $0x8] sm:$0xf]  ;;  %v973_v41 = vld [vmem:[#allocation2 + $0xc] sm:$0xf] }
  0xb5   : > { %933 = vmatpush.bf16.xpose.msra.mxu0 %v924_v40  ;;  %982 = vmatpush.bf16.xpose.msra.mxu2 %v973_v41  ;;  %698 = vst [vmem:[#allocation3] sm:$0xff] %v696_v39 }
  0xb7   : > { %v679_v44 = vpop.f32.mrf.mxu2  ;;  %v692_v45 = vpop.f32.mrf.mxu3 }
  0xb8   : > { %v655_v46 = vpop.f32.mrf.mxu0  ;;  %v668_v47 = vpop.f32.mrf.mxu1  ;;  %v680_v48 = vadd.f32 %v679_v44, %v595_v42  ;;  %v693_v49 = vadd.f32 %v692_v45, %v596_v43 }
  0xba   : > { %v697_v50 = vpack.c.bf16 %v693_v49, %v680_v48 }
  0xbc   : > { %699 = vst [vmem:[#allocation3 + $0x8] sm:$0xff] %v697_v50  ;;  %v825_v52 = vld [vmem:[#allocation3] sm:$0xf]  ;;  %v876_v53 = vld [vmem:[#allocation3 + $0x4] sm:$0xf] }
  0xbd   : > { %v855_v54 = vsel %vm853_vm1, %v825_v52, 0  ;;  %v904_v55 = vsel %vm853_vm1, %v876_v53, 0 }
  0xbe   : > { %864 = vmatpush.bf16.msrb.mxu1 %v855_v54  ;;  %913 = vmatpush.bf16.msrb.mxu3 %v904_v55 }
  0xbf   : > { %v681_v58 = vpop.f32.mrf.mxu2  ;;  %v694_v59 = vpop.f32.mrf.mxu3 }
  0xc0   : > { %v772_v60 = vpop.f32.mrf.mxu0  ;;  %v785_v61 = vpop.f32.mrf.mxu1 }
  0xc1   : > { %v773_v62 = vadd.f32 %v772_v60, %v711_v56  ;;  %v786_v63 = vadd.f32 %v785_v61, %v712_v57  ;;  %v1751_v60 = vld [vmem:[%s2386_s9 + $0x38] sm:$0xff] }
  0xc2   : > { %v1759_v61 = vld [vmem:[%s2386_s9 + $0x78] sm:$0xff] }
  0xc3   : > { %v815_v0 = vmul.f32 0.35355338, %v773_v62  ;;  %v816_v1 = vmul.f32 0.35355338, %v786_v63  ;;  %v925_v2 = vld [vmem:[#allocation3 + $0x8] sm:$0xf] }
  0xc4   : > { %v953_v5 = vsel %vm853_vm1, %v925_v2, 0  ;;  %v974_v6 = vld [vmem:[#allocation3 + $0xc] sm:$0xf]  ;;  %v1750_v62 = vld [vmem:[%s2386_s9 + $0x30] sm:$0xff]  ;;  %v1748_v2 = vld [vmem:[%s2386_s9 + $0x20] sm:$0xff] }
  0xc5   : > { %v819_v7 = vpack.c.bf16 %v816_v1, %v815_v0  ;;  %962 = vmatpush.bf16.msra.mxu1 %v953_v5  ;;  %v1002_v8 = vsel %vm853_vm1, %v974_v6, 0  ;;  %v1758_v63 = vld [vmem:[%s2386_s9 + $0x70] sm:$0xff]  ;;  %v1749_v0 = vld [vmem:[%s2386_s9 + $0x28] sm:$0xff]  ;;  %v1755_v5 = vld [vmem:[%s2386_s9 + $0x58] sm:$0xff] }
  0xc6   : > { %1011 = vmatpush.bf16.msra.mxu3 %v1002_v8  ;;  %v1757_v1 = vld [vmem:[%s2386_s9 + $0x68] sm:$0xff]  ;;  %v1746_v6 = vld [vmem:[%s2386_s9 + $0x10] sm:$0xff]  ;;  %v1767_v8 = vld [vmem:[%s2386_s9 + $0xb8] sm:$0xff] }
  0xc7   : > { %821 = vst [vmem:[#allocation4] sm:$0xff] %v819_v7  ;;  %v798_v9 = vpop.f32.mrf.mxu2  ;;  %v811_v10 = vpop.f32.mrf.mxu3  ;;  %v1754_v7 = vld [vmem:[%s2386_s9 + $0x50] sm:$0xff] }
  0xc8   : > { %v774_v11 = vpop.f32.mrf.mxu0  ;;  %v787_v12 = vpop.f32.mrf.mxu1  ;;  %v799_v13 = vadd.f32 %v798_v9, %v713_v3  ;;  %v812_v14 = vadd.f32 %v811_v10, %v714_v4  ;;  %v1756_v3 = vld [vmem:[%s2386_s9 + $0x60] sm:$0xff]  ;;  %v1747_v4 = vld [vmem:[%s2386_s9 + $0x18] sm:$0xff]  ;;  %v1745_v10 = vld [vmem:[%s2386_s9 + $0x8] sm:$0xff] }
  0xc9   : > { %v1775_v9 = vld [vmem:[%s2386_s9 + $0xf8] sm:$0xff]  ;;  %v1753_v11 = vld [vmem:[%s2386_s9 + $0x48] sm:$0xff]  ;;  %v1766_v12 = vld [vmem:[%s2386_s9 + $0xb0] sm:$0xff] }
  0xca   : > { %v817_v15 = vmul.f32 0.35355338, %v799_v13  ;;  %v818_v16 = vmul.f32 0.35355338, %v812_v14  ;;  %v1774_v13 = vld [vmem:[%s2386_s9 + $0xf0] sm:$0xff]  ;;  %v1744_v14 = vld [vmem:[%s2386_s9] sm:$0xff] }
  0xcc   : > { %v820_v17 = vpack.c.bf16 %v818_v16, %v817_v15  ;;  %v1752_v15 = vld [vmem:[%s2386_s9 + $0x40] sm:$0xff]  ;;  %v1765_v16 = vld [vmem:[%s2386_s9 + $0xa8] sm:$0xff] }
  0xce   : > { %822 = vst [vmem:[#allocation4 + $0x8] sm:$0xff] %v820_v17  ;;  %v823_v18 = vld [vmem:[#allocation4] sm:$0xf]  ;;  %v874_v19 = vld [vmem:[#allocation4 + $0x4] sm:$0xf]  ;;  %v1773_v17 = vld [vmem:[%s2386_s9 + $0xe8] sm:$0xff] }
  0xcf   : > { %834 = vmatmul.bf16.vlgmr.msrb.gmra.mxu0 %v823_v18  ;;  %885 = vmatmul.bf16.vlgmr.msrb.gmra.mxu2 %v874_v19  ;;  %v800_v20 = vpop.f32.mrf.mxu2  ;;  %v813_v21 = vpop.f32.mrf.mxu3  ;;  %v1764_v18 = vld [vmem:[%s2386_s9 + $0xa0] sm:$0xff] }
  0xd0   : > { %1297 = vmatpush.bf16.msrb.mxu0 %v1751_v60  ;;  %1323 = vmatpush.bf16.msrb.mxu2 %v1767_v8  ;;  %v1772_v19 = vld [vmem:[%s2386_s9 + $0xe0] sm:$0xff]  ;;  %v1763_v20 = vld [vmem:[%s2386_s9 + $0x98] sm:$0xff] }
  0xd1   : > { %v1771_v21 = vld [vmem:[%s2386_s9 + $0xd8] sm:$0xff] }
  0xd4   : > { %1298 = vmatpush.bf16.msrb.mxu0 %v1750_v62  ;;  %1324 = vmatpush.bf16.msrb.mxu2 %v1766_v12 }
  0xd5   : > { %v923_v22 = vld [vmem:[#allocation4 + $0x8] sm:$0xf]  ;;  %v972_v23 = vld [vmem:[#allocation4 + $0xc] sm:$0xf] }
  0xd8   : > { %1299 = vmatpush.bf16.msrb.mxu0 %v1749_v0  ;;  %1325 = vmatpush.bf16.msrb.mxu2 %v1765_v16 }
  0xdc   : > { %1300 = vmatpush.bf16.msrb.mxu0 %v1748_v2  ;;  %1326 = vmatpush.bf16.msrb.mxu2 %v1764_v18  ;;  %v1831_v2 = vld [vmem:[%s2387_s10] ss:$0 sm:$0xff] }
  0xdf   : > { %934 = vmatmul.bf16.vlgmr.msra.gmra.mxu0 %v923_v22  ;;  %983 = vmatmul.bf16.vlgmr.msra.gmra.mxu2 %v972_v23 }
  0xe0   : > { %1301 = vmatpush.bf16.msrb.mxu0 %v1747_v4  ;;  %1327 = vmatpush.bf16.msrb.mxu2 %v1763_v20 }
  0xe4   : > { %1302 = vmatpush.bf16.msrb.mxu0 %v1746_v6 }
  0xe8   : > { %1303 = vmatpush.bf16.msrb.mxu0 %v1745_v10 }
  0xec   : > { %1304 = vmatpush.bf16.msrb.mxu0 %v1744_v14 }
 0x14c   : > { %v835_v24 = vpop.f32.mrf.mxu0 }
 0x14d   : > { %v840_v29 = vsel %vm839_vm2, %v835_v24, -inf }
 0x152   : > { %v886_v25 = vpop.f32.mrf.mxu2 }
 0x153   : > { %v890_v26 = vsel %vm839_vm2, %v886_v25, -inf }
 0x154   : > { %891 = vmax.xlane.f32.xlu0 %v890_v26  ;;  %v837_v27 = vpop.f32.mrf.mxu0  ;;  %v1761_v26 = vld [vmem:[%s2386_s9 + $0x88] sm:$0xff] }
 0x155   : > { %v1769_v27 = vld [vmem:[%s2386_s9 + $0xc8] sm:$0xff] }
 0x15a   : > { %v888_v28 = vpop.f32.mrf.mxu2 }
 0x15c   : > { %841 = vmax.xlane.f32.xlu0 %v840_v29  ;;  %v935_v30 = vpop.f32.mrf.mxu0 }
 0x15d   : > { %v939_v35 = vsel %vm839_vm2, %v935_v30, -inf }
 0x162   : > { %v984_v31 = vpop.f32.mrf.mxu2 }
 0x163   : > { %v988_v32 = vsel %vm839_vm2, %v984_v31, -inf }
 0x164   : > { %989 = vmax.xlane.f32.xlu1 %v988_v32  ;;  %v937_v33 = vpop.f32.mrf.mxu0  ;;  %v1768_v32 = vld [vmem:[%s2386_s9 + $0xc0] sm:$0xff] }
 0x16a   : > { %v986_v34 = vpop.f32.mrf.mxu2 }
 0x16c   : > { %940 = vmax.xlane.f32.xlu1 %v939_v35 }
 0x1c7   : > { %v892_v36 = vpop.xlane.xlu0 %891 }
 0x1c8   : > { %v893_v37 = vsub.f32 %v886_v25, %v892_v36  ;;  %v1770_v25 = vld [vmem:[%s2386_s9 + $0xd0] sm:$0xff] }
 0x1ca   : > { %v894_v38 = vmul.f32 1.442695, %v893_v37 }
 0x1cc   : > { %1832 = vpow2.f32 %v894_v38 }
 0x1cf   : > { %v842_v39 = vpop.xlane.xlu0 %841 }
 0x1d0   : > { %v843_v40 = vsub.f32 %v835_v24, %v842_v39  ;;  %v1762_v24 = vld [vmem:[%s2386_s9 + $0x90] sm:$0xff] }
 0x1d1   : > { %1328 = vmatpush.bf16.msrb.mxu2 %v1762_v24 }
 0x1d2   : > { %v1833_v41 = vpop.eup %1832  ;;  %v844_v42 = vmul.f32 1.442695, %v843_v40 }
 0x1d3   : > { %v899_v43 = vpack.c.bf16 %v1833_v41, %v1833_v41  ;;  %v896_v44 = vsel %vm839_vm2, %v1833_v41, 0.0 }
 0x1d4   : > { %1834 = vpow2.f32 %v844_v42  ;;  %897 = vadd.xlane.f32.xlu1 %v896_v44 }
 0x1d5   : > { %1585 = vmatmul.msk.bf16.vlgmr.msrb.gmra.mxu3 %vm839_vm2, %v899_v43  ;;  %1329 = vmatpush.bf16.msrb.mxu2 %v1761_v26 }
 0x1d6   : > { %1336 = vmatpush.bf16.msrb.mxu3 %v1775_v9 }
 0x1d7   : > { %v990_v45 = vpop.xlane.xlu1 %989 }
 0x1d8   : > { %v991_v46 = vsub.f32 %v984_v31, %v990_v45  ;;  %v1760_v31 = vld [vmem:[%s2386_s9 + $0x80] sm:$0xff] }
 0x1d9   : > { %1330 = vmatpush.bf16.msrb.mxu2 %v1760_v31 }
 0x1da   : > { %v1835_v47 = vpop.eup %1834  ;;  %v992_v48 = vmul.f32 1.442695, %v991_v46  ;;  %1337 = vmatpush.bf16.msrb.mxu3 %v1774_v13 }
 0x1db   : > { %v849_v49 = vpack.c.bf16 %v1835_v47, %v1835_v47  ;;  %v846_v50 = vsel %vm839_vm2, %v1835_v47, 0.0 }
 0x1dc   : > { %1836 = vpow2.f32 %v992_v48  ;;  %847 = vadd.xlane.f32.xlu0 %v846_v50 }
 0x1dd   : > { %1584 = vmatmul.msk.bf16.vlgmr.msrb.gmra.mxu1 %vm839_vm2, %v849_v49 }
 0x1de   : > { %1310 = vmatpush.bf16.msrb.mxu1 %v1759_v61  ;;  %1338 = vmatpush.bf16.msrb.mxu3 %v1773_v17 }
 0x1df   : > { %v941_v51 = vpop.xlane.xlu1 %940 }
 0x1e0   : > { %v942_v52 = vsub.f32 %v935_v30, %v941_v51 }
 0x1e2   : > { %v1837_v53 = vpop.eup %1836  ;;  %v943_v54 = vmul.f32 1.442695, %v942_v52  ;;  %1311 = vmatpush.bf16.msrb.mxu1 %v1758_v63  ;;  %1339 = vmatpush.bf16.msrb.mxu3 %v1772_v19 }
 0x1e3   : > { %v997_v55 = vpack.c.bf16 %v1837_v53, %v1837_v53  ;;  %v994_v59 = vsel %vm839_vm2, %v1837_v53, 0.0 }
 0x1e4   : > { %1838 = vpow2.f32 %v943_v54 }
 0x1e5   : > { %1587 = vmatmul.msk.bf16.vlgmr.msra.gmra.mxu3 %vm839_vm2, %v997_v55 }
 0x1e6   : > { %1312 = vmatpush.bf16.msrb.mxu1 %v1757_v1  ;;  %1340 = vmatpush.bf16.msrb.mxu3 %v1771_v21 }
 0x1ea   : > { %v1839_v56 = vpop.eup %1838  ;;  %1313 = vmatpush.bf16.msrb.mxu1 %v1756_v3  ;;  %1341 = vmatpush.bf16.msrb.mxu3 %v1770_v25 }
 0x1eb   : > { %v948_v57 = vpack.c.bf16 %v1839_v56, %v1839_v56  ;;  %v945_v58 = vsel %vm839_vm2, %v1839_v56, 0.0 }
 0x1ec   : > { %946 = vadd.xlane.f32.xlu2 %v945_v58 }
 0x1ed   : > { %1586 = vmatmul.msk.bf16.vlgmr.msra.gmra.mxu1 %vm839_vm2, %v948_v57 }
 0x1ee   : > { %1314 = vmatpush.bf16.msrb.mxu1 %v1755_v5  ;;  %1342 = vmatpush.bf16.msrb.mxu3 %v1769_v27 }
 0x1f2   : > { %1315 = vmatpush.bf16.msrb.mxu1 %v1754_v7  ;;  %1343 = vmatpush.bf16.msrb.mxu3 %v1768_v32 }
 0x1f4   : > { %995 = vadd.xlane.f32.xlu2 %v994_v59 }
 0x1f6   : > { %1316 = vmatpush.bf16.msrb.mxu1 %v1753_v11 }
 0x1fa   : > { %1317 = vmatpush.bf16.msrb.mxu1 %v1752_v15 }
 0x247   : > { %v898_v22 = vpop.xlane.xlu1 %897 }
 0x248   : > { %1840 = vrcp.f32 %v898_v22 }
 0x24e   : > { %v1841_v28 = vpop.eup %1840 }
 0x24f   : > { %v848_v23 = vpop.xlane.xlu0 %847 }
 0x250   : > { %1842 = vrcp.f32 %v848_v23 }
 0x256   : > { %v1843_v33 = vpop.eup %1842 }
 0x258   : > { %v915_v29 = vpop.f32.mrf.mxu3 }
 0x259   : > { %v920_v30 = vmul.f32 %v1841_v28, %v915_v29 }
 0x25a   : > { %v866_v34 = vpop.f32.mrf.mxu1 }
 0x25b   : > { %v921_v35 = vpack.c.bf16 %v920_v30, %v920_v30  ;;  %v871_v36 = vmul.f32 %v1843_v33, %v866_v34 }
 0x25d   : > { %922 = vst [vmem:[#allocation5 + $0x4] sm:$0xf] %v921_v35  ;;  %v872_v37 = vpack.c.bf16 %v871_v36, %v871_v36 }
 0x25f   : > { %873 = vst [vmem:[#allocation5] sm:$0xf] %v872_v37  ;;  %v947_v38 = vpop.xlane.xlu2 %946 }
 0x260   : > { %v917_v39 = vpop.f32.mrf.mxu3  ;;  %1844 = vrcp.f32 %v947_v38 }
 0x262   : > { %v868_v40 = vpop.f32.mrf.mxu1 }
 0x266   : > { %v1021_v41 = vld [vmem:[#allocation5] sm:$0xff]  ;;  %v1845_v48 = vpop.eup %1844 }
 0x267   : > { %v996_v42 = vpop.xlane.xlu2 %995  ;;  %v1093_v43 = vunpack.c.l.b16 %v1021_v41  ;;  %v1094_v44 = vunpack.c.h.b16 %v1021_v41 }
 0x268   : > { %1846 = vrcp.f32 %v996_v42  ;;  %v1013_v45 = vpop.f32.mrf.mxu3 }
 0x269   : > { %v1097_v46 = vpack.c.b16 %v1093_v43, %v1093_v43  ;;  %v1098_v47 = vpack.c.b16 %v1094_v44, %v1094_v44 }
 0x26a   : > { %v964_v49 = vpop.f32.mrf.mxu1 }
 0x26b   : > { %v969_v50 = vmul.f32 %v1845_v48, %v964_v49  ;;  %1305 = vmatmul.bf16.vlgmr.msrb.gmra.mxu0 %v1097_v46  ;;  %1318 = vmatmul.bf16.vlgmr.msrb.gmra.mxu1 %v1098_v47 }
 0x26d   : > { %v970_v51 = vpack.c.bf16 %v969_v50, %v969_v50 }
 0x26e   : > { %v1847_v52 = vpop.eup %1846 }
 0x26f   : > { %v1018_v53 = vmul.f32 %v1847_v52, %v1013_v45  ;;  %971 = vst [vmem:[#allocation5 + $0x8] sm:$0xf] %v970_v51 }
 0x270   : > { %v1015_v54 = vpop.f32.mrf.mxu3 }
 0x271   : > { %v1019_v55 = vpack.c.bf16 %v1018_v53, %v1018_v53 }
 0x272   : > { %v966_v56 = vpop.f32.mrf.mxu1 }
 0x273   : > { %1020 = vst [vmem:[#allocation5 + $0xc] sm:$0xf] %v1019_v55 }
 0x27a   : > { %v1022_v57 = vld [vmem:[#allocation5 + $0x8] sm:$0xff] }
 0x27b   : > { %v1095_v58 = vunpack.c.l.b16 %v1022_v57  ;;  %v1096_v59 = vunpack.c.h.b16 %v1022_v57 }
 0x27d   : > { %v1099_v60 = vpack.c.b16 %v1095_v58, %v1095_v58  ;;  %v1100_v61 = vpack.c.b16 %v1096_v59, %v1096_v59 }
 0x27f   : > { %1331 = vmatmul.bf16.vlgmr.msrb.gmra.mxu2 %v1099_v60  ;;  %1344 = vmatmul.bf16.vlgmr.msrb.gmra.mxu3 %v1100_v61 }
 0x2e8   : > { %v1306_v62 = vpop.f32.mrf.mxu0  ;;  %v1319_v63 = vpop.f32.mrf.mxu1 }
 0x2e9   : > { %v1307_v3 = vadd.f32 %v1831_v2, %v1306_v62 }
 0x2eb   : > { %v1320_v4 = vadd.f32 %v1319_v63, %v1307_v3 }
 0x2f0   : > { %v1308_v0 = vpop.f32.mrf.mxu0  ;;  %v1321_v1 = vpop.f32.mrf.mxu1 }
 0x302   : > { %v1332_v5 = vpop.f32.mrf.mxu2  ;;  %v1345_v6 = vpop.f32.mrf.mxu3 }
 0x303   : > { %v1333_v7 = vadd.f32 %v1332_v5, %v1320_v4 }
 0x305   : > { %v1346_v8 = vadd.f32 %v1345_v6, %v1333_v7 }
 0x307   : > { %1349 = vst.msk [vmem:[%s439_s15] sm:$0xff] %vm523_vm0, %v1346_v8 }
 0x308   : > { %1875 = shalt.err (!%p1872_p5)
}
 0x309   : > { %1776 = dma.vmem_to_hbm [thread:$0]  (%p2028_p4), %s1366_s5, 128, %s1368_s16, %s1351_s25  }
 0x30a   : > { %v1334_v9 = vpop.f32.mrf.mxu2  ;;  %v1347_v10 = vpop.f32.mrf.mxu3 }
 0x30b PF: > { %p1782_p6 = scmp.ge.s32.totalorder %s1926_s22, 2  ;;  %s1379_s28 = sand.u32 1, %s1906_s17  }
 0x30c   : > { %s1380_s14 = scalar_lea.sflag [#allocation7], %s1379_s28 }
 0x30d   : > { %p1779_p7 = pnand %p1782_p6, %p2035_p8 }
 0x30f   : > { %p1780_p9 = pneg %p1779_p7 }
 0x311   : > { %1901 = dma.done.wait (%p1780_p9), %s1380_s14, 128  }
 0x312   : > { %1903 = vsyncadd (%p1780_p9), %s1380_s14, 4294967168  ;;  %s24_s22 = sadd.s32 1, %s1926_s22   ;;  %s2397_s20 = sld [smem:[#allocation9_spill]] }
 0x313   : > { %p21_p10 = scmp.ge.s32.totalorder %s24_s22, 4   ;;  %s2398_s21 = sld [smem:[#allocation10_spill]] }
 0x314   : > { %s2399_s17 = smov %s1910_s18  ;;  %s2400_s18 = smov %s1914_s19 }
 0x315   : > { %s2401_s19 = smov %s2041_s30  ;;  %23 = sbr.rel (!%p21_p10) target bundleno = 6 (0x6), region = 109 }
 0x31a   :  { %1386 = vsyncpa [#allocation7], 1 }
 0x31b   :  { %1388 = vsyncpa [#allocation7 + $0x1], 1 }

</bundles_post_ra>
